<compile_context>
chip_gen: v7x
topology: tpu7x:2x2x1
jax: 0.10.0
libtpu: 0.0.40
codegen_flags: <defaults>
</compile_context>

<pallas_src>
import functools

import jax
import jax.numpy as jnp
from jax import lax
from jax.experimental import pallas as pl
from jax.experimental.pallas import tpu as pltpu

LANE = 128
SUBLANE = 8


def _round_up(x, m):
    return (x + m - 1) // m * m


def _embedding_onehot_kernel(idx_ref, table_ref, out_ref):
    # idx_ref:   VMEM (tile_n, 1)     int32    per-tile ids (sublane oriented)
    # table_ref: VMEM (V_pad, D_pad)  table dtype (resident: constant index_map)
    # out_ref:   VMEM (tile_n, D_pad) table dtype
    tile_n = out_ref.shape[0]
    v_pad = table_ref.shape[0]
    # (tile_n, V_pad) one-hot on the VPU: row r has a single 1 at column idx[r].
    onehot = (
        lax.broadcasted_iota(jnp.int32, (tile_n, v_pad), 1) == idx_ref[...]
    ).astype(table_ref.dtype)
    # One MXU matmul per tile replaces tile_n sequential (1, D) row copies.
    out_ref[...] = jnp.dot(
        onehot, table_ref[...], preferred_element_type=jnp.float32
    ).astype(out_ref.dtype)


@functools.partial(
    jax.jit, static_argnames=("num_level", "embedding_dim", "tile_n")
)
def _embedding_forward_pallas(x, table_padded, *, num_level, embedding_dim,
                              tile_n):
    b, s = x.shape
    v_pad, d_pad = table_padded.shape
    n = b * s

    # Row tile: multiple of 8 sublanes, clipped for tiny inputs.
    tile = _round_up(min(tile_n, _round_up(n, SUBLANE)), SUBLANE)
    n_pad = _round_up(n, tile)

    # Clamp ONCE here (torch.nn.Embedding would raise on out-of-range ids;
    # we clamp — documented divergence).  Pad rows gather row 0, sliced off.
    idx = jnp.clip(x.reshape(n).astype(jnp.int32), 0, num_level - 1)
    idx = jnp.pad(idx, (0, n_pad - n)).reshape(n_pad, 1)

    # Raise the scoped-VMEM limit only when the resident table + pipeline
    # buffers would exceed the default (keeps v7x's 64 MiB/TC in mind).
    itemsize = table_padded.dtype.itemsize
    vmem_est = (
        2 * v_pad * d_pad * itemsize        # table (worst case double-buffered)
        + 2 * tile * d_pad * itemsize       # output double buffer
        + 2 * tile * LANE * 4               # index blocks (lane-padded)
        + (tile * v_pad + tile * d_pad) * 4  # one-hot + matmul result
    )
    vmem_limit = None
    if vmem_est > (24 << 20):
        vmem_limit = min(int(vmem_est * 3 // 2), 112 << 20)

    out_flat = pl.pallas_call(
        _embedding_onehot_kernel,
        out_shape=jax.ShapeDtypeStruct((n_pad, d_pad), table_padded.dtype),
        grid_spec=pltpu.PrefetchScalarGridSpec(
            num_scalar_prefetch=0,
            grid=(n_pad // tile,),
            in_specs=[
                # per-tile indices, streamed as (tile, 1) VMEM blocks
                pl.BlockSpec((tile, 1), lambda i: (i, 0)),
                # full table, invariant across the grid (fetched once, reused)
                pl.BlockSpec((v_pad, d_pad), lambda i: (0, 0)),
            ],
            out_specs=pl.BlockSpec((tile, d_pad), lambda i: (i, 0)),
        ),
        compiler_params=pltpu.CompilerParams(
            dimension_semantics=("parallel",),
            vmem_limit_bytes=vmem_limit,
        ),
    )(idx, table_padded)

    return out_flat[:n, :embedding_dim].reshape(b, s, embedding_dim)


class EntityEmbeddingLayer:
    """JAX/Pallas port of the PyTorch EntityEmbeddingLayer."""

    _PALLAS_MIN_ROWS = 4096          # below this, XLA's native gather wins
    _VMEM_TABLE_BUDGET = 40 << 20    # resident-table cap (v7x: 64 MiB / TC)

    def __init__(self, num_level, embedding_dim, name, *, key,
                 dtype=jnp.float32):
        self.name = name
        self.num_level = num_level
        self.embedding_dim = embedding_dim
        # nn.Embedding default init: weight ~ N(0, 1)
        self.weight = jax.random.normal(key, (num_level, embedding_dim), dtype)
        # Pad ONCE at init (not inside the jitted forward):
        #   V -> multiple of 128 (MXU contraction dim, one-hot columns)
        #   D -> multiple of 128 (lane-dense output stores)
        v_pad = _round_up(num_level, LANE)
        d_pad = _round_up(embedding_dim, LANE)
        self._table_padded = jnp.pad(
            self.weight,
            ((0, v_pad - num_level), (0, d_pad - embedding_dim)),
        )

    def __call__(self, x, *, tile_n=256, force_pallas=False):
        n = x.shape[0] * x.shape[1]
        table_bytes = self._table_padded.size * self._table_padded.dtype.itemsize
        use_pallas = force_pallas or n >= self._PALLAS_MIN_ROWS
        if table_bytes > self._VMEM_TABLE_BUDGET:
            # TODO(synk): manual-DMA gather path for huge vocabularies.
            use_pallas = False
        if not use_pallas:
            # Tiny lookup / oversized table: XLA native gather.
            safe = jnp.clip(x, 0, self.num_level - 1)
            return jnp.take(self.weight, safe, axis=0)
        return _embedding_forward_pallas(
            x, self._table_padded,
            num_level=self.num_level,
            embedding_dim=self.embedding_dim,
            tile_n=tile_n,
        )


if __name__ == "__main__":
    # Module hyper-parameters (synthetic, deterministic init — no checkpoint).
    num_level = 32       # vocabulary size of the entity ids
    embedding_dim = 32   # embedding width
    batch, seq = 2, 8

    key = jax.random.PRNGKey(0)
    k_table, k_idx = jax.random.split(key)

    layer = EntityEmbeddingLayer(num_level, embedding_dim, "entity",
                                 key=k_table)
    x = jax.random.randint(k_idx, (batch, seq), 0, num_level, dtype=jnp.int32)

    # Exercise the Pallas kernel explicitly (the dispatcher would route this
    # tiny lookup to jnp.take).
    out = layer(x, force_pallas=True)
    out = jax.block_until_ready(out)

    # Reference: plain JAX gather (same semantics as torch.nn.Embedding).
    ref = jnp.take(layer.weight, x, axis=0)
    assert out.shape == (batch, seq, embedding_dim)
    # One-hot selection is exact up to the MXU's f32 pass configuration;
    # tolerance comfortably covers even a single-bf16-pass matmul.
    assert jnp.allclose(out, ref, rtol=5e-3, atol=5e-3), \
        "mismatch vs reference gather"

    # Dispatcher fast path (tiny N -> XLA gather) must agree as well.
    out_small = jax.block_until_ready(layer(x))
    assert jnp.allclose(out_small, ref)

    print("KERNEL_OK")
</pallas_src>

<mosaic_0001>
module attributes {stable_mosaic.version = 11 : i64} {
  func.func @_embedding_onehot_kernel(%arg0: i32, %arg1: memref<16x1xi32, #tpu.memory_space<vmem>>, %arg2: memref<128x128xf32, #tpu.memory_space<vmem>>, %arg3: memref<16x128xf32, #tpu.memory_space<vmem>>) attributes {dimension_semantics = [#tpu.dimension_semantics<parallel>], iteration_bounds = array<i64: 1>, scalar_prefetch = 0 : i64, scratch_operands = 0 : i64, tpu.core_type = #tpu.core_type<tc>, window_params = [{transform_indices = @transform_0, window_bounds = array<i64: 16, 1>}, {pipeline_mode = #tpu.pipeline_mode<synchronous>, transform_indices = @transform_1, window_bounds = array<i64: 128, 128>}, {transform_indices = @transform_2, window_bounds = array<i64: 16, 128>}]} {
    %0 = tpu.iota {dimensions = array<i32: 1>} : vector<16x128xi32>
    %c0 = arith.constant 0 : index
    %c0_0 = arith.constant 0 : index
    %1 = vector.load %arg1[%c0, %c0_0] : memref<16x1xi32, #tpu.memory_space<vmem>>, vector<16x1xi32>
    %2 = vector.broadcast %1 : vector<16x1xi32> to vector<16x128xi32>
    %3 = arith.cmpi eq, %0, %2 : vector<16x128xi32>
    %4 = arith.extui %3 : vector<16x128xi1> to vector<16x128xi32>
    %5 = arith.sitofp %4 : vector<16x128xi32> to vector<16x128xf32>
    %c0_1 = arith.constant 0 : index
    %c0_2 = arith.constant 0 : index
    %6 = vector.load %arg2[%c0_1, %c0_2] : memref<128x128xf32, #tpu.memory_space<vmem>>, vector<128x128xf32>
    %cst = arith.constant dense<0.000000e+00> : vector<16x128xf32>
    %7 = tpu.matmul %5, %6, %cst {dimension_numbers = #tpu.dot_dimension_numbers<[1], [0], [0], [1], [0, 0, 1, 1], [], []>} : vector<16x128xf32>, vector<128x128xf32>, vector<16x128xf32> -> vector<16x128xf32>
    %c0_3 = arith.constant 0 : index
    %c0_4 = arith.constant 0 : index
    %8 = vector.load %arg3[%c0_3, %c0_4] : memref<16x128xf32, #tpu.memory_space<vmem>>, vector<16x128xf32>
    tpu.vector_store %arg3[%c0_3, %c0_4], %7 {strides = array<i32>} : memref<16x128xf32, #tpu.memory_space<vmem>>, vector<16x128xf32>,
    return
  }
  func.func @transform_0(%arg0: i32) -> (i32, i32) {
    %c0_i32 = arith.constant 0 : i32
    %c0_i32_0 = arith.constant 0 : i32
    return %arg0, %c0_i32 : i32, i32
  }
  func.func @transform_1(%arg0: i32) -> (i32, i32) {
    %c0_i32 = arith.constant 0 : i32
    %c0_i32_0 = arith.constant 0 : i32
    %c0_i32_1 = arith.constant 0 : i32
    return %c0_i32, %c0_i32_0 : i32, i32
  }
  func.func @transform_2(%arg0: i32) -> (i32, i32) {
    %c0_i32 = arith.constant 0 : i32
    %c0_i32_0 = arith.constant 0 : i32
    return %arg0, %c0_i32 : i32, i32
  }
}

</mosaic_0001>

<bundles_post_ra>
// kernel: _embedding_forward_pallas.1
= control target key start
LH: loop header
LB: loop body
LE: loop exit
PB: predicated region body
PF: predicated region fallthrough
CT: control target
= control target key end

     0   :  { %7 = vsyncpa [#allocation3], 0  ;;  %s258_s9 = smov [#allocation2]   ;;  %s302_s0 = inlined_call_operand.vmem [shape: s32[16,1], index: 0, kind: input, shape index: {}]   ;;  %s303_s1 = inlined_call_operand.hbm [shape: f32[128,128], index: 1, kind: input, shape index: {}]   ;;  %s304_s2 = inlined_call_operand.vmem [shape: f32[16,128], index: 2, kind: output, shape index: {}]  }
   0x1   :  { %s15_s10 = sshll.u32 %s258_s9, 4  ;;  %s234_s13 = scalar_lea.hbm %s303_s1, 2048  ;;  %s16_s10 = int_to_ptr.vmem [resolvable:$true] %s15_s10 }
   0x2   :  { %p235_p0 = scmp.ne.s32.totalorder %s303_s1, %s234_s13  ;;  %p238_p1 = scmp.lt.u32.totalorder %s234_s13, %s303_s1 }
   0x4   :  { %p240_p2 = pnand %p238_p1, %p235_p0 }
   0x6   :  { %243 = shalt.err (!%p240_p2)
}
   0x7   :  { %s244_s18 = scalar_lea.vmem %s16_s10, 2048  ;;  %p249_p4 = scmp.lt.s32.totalorder %s16_s10, %s16_s10 }
   0x8   :  { %p245_p3 = scmp.ne.s32.totalorder %s16_s10, %s244_s18  ;;  %p250_p5 = scmp.lt.s32.totalorder %s244_s18, %s244_s18 }
   0xa   :  { %p251_p6 = por %p250_p5, %p249_p4 }
   0xc   :  { %p252_p7 = pnand %p251_p6, %p245_p3 }
   0xe   :  { %255 = shalt.err (!%p252_p7)
}
   0xf   :  { %s259_s19 = smov 128   ;;  %s260_s20 = smov 8  }
  0x10   :  { %21 = dma.hbm_to_vmem [thread:$0]  %s303_s1, 2048, %s16_s10, [#allocation3], %s259_s19, %s259_s19, %s260_s20  }
  0x11   :  { %256 = dma.done.wait [#allocation3], 2048  }
  0x12   :  { %257 = vsyncadd [#allocation3], 4294965248  ;;  %v261_v0 = vmov 0   ;;  %v27_v1 = vld [vmem:[%s302_s0] sm:$0xff]  ;;  %v42_v3 = vld [vmem:[#allocation2 + $0x8] sm:$0xff]  ;;  %v25_v27 = vlaneseq  ;;  %v262_v30 = vmov 1.0  }
  0x13   :  { %233 = vset.pattern.permute.xlu0 %v261_v0  ;;  %v41_v2 = vld [vmem:[#allocation2] sm:$0xff]  ;;  %v43_v4 = vld [vmem:[#allocation2 + $0x10] sm:$0xff]  ;;  %v44_v5 = vld [vmem:[#allocation2 + $0x18] sm:$0xff] }
  0x14   :  { %30 = vperm.xlu0 %233, %v27_v1   ;;  %v28_v6 = vld [vmem:[%s302_s0 + $0x8] sm:$0xff]  ;;  %v196_v7 = vpack.c.bf16 %v42_v3, %v41_v2  ;;  %v200_v8 = vpack.c.bf16 %v44_v5, %v43_v4  ;;  %v45_v9 = vld [vmem:[#allocation2 + $0x20] sm:$0xff]  ;;  %v47_v12 = vld [vmem:[#allocation2 + $0x30] sm:$0xff]  ;;  %v26_v28 = vand.u32 127, %v25_v27 }
  0x15   :  { %v46_v10 = vld [vmem:[#allocation2 + $0x28] sm:$0xff]  ;;  %v48_v13 = vld [vmem:[#allocation2 + $0x38] sm:$0xff]  ;;  %v49_v15 = vld [vmem:[#allocation2 + $0x40] sm:$0xff] }
  0x16   :  { %197 = vmatprep.subr.bf16.mxu0 %v196_v7  ;;  %v204_v11 = vpack.c.bf16 %v46_v10, %v45_v9  ;;  %v208_v14 = vpack.c.bf16 %v48_v13, %v47_v12  ;;  %v50_v16 = vld [vmem:[#allocation2 + $0x48] sm:$0xff]  ;;  %v51_v18 = vld [vmem:[#allocation2 + $0x50] sm:$0xff]  ;;  %v52_v19 = vld [vmem:[#allocation2 + $0x58] sm:$0xff] }
  0x17   :  { %199 = vmatpush3.bf16.msra.mxu0 %v196_v7  ;;  %v212_v17 = vpack.c.bf16 %v50_v16, %v49_v15  ;;  %v216_v20 = vpack.c.bf16 %v52_v19, %v51_v18  ;;  %v53_v21 = vld [vmem:[#allocation2 + $0x60] sm:$0xff]  ;;  %v54_v22 = vld [vmem:[#allocation2 + $0x68] sm:$0xff]  ;;  %v55_v24 = vld [vmem:[#allocation2 + $0x70] sm:$0xff] }
  0x18   :  { %33 = vperm.xlu0 %233, %v28_v6   ;;  %201 = vmatprep.subr.bf16.mxu0 %v200_v8  ;;  %v220_v23 = vpack.c.bf16 %v54_v22, %v53_v21  ;;  %v56_v25 = vld [vmem:[#allocation2 + $0x78] sm:$0xff] }
  0x19   :  { %v224_v26 = vpack.c.bf16 %v56_v25, %v55_v24 }
  0x1b   :  { %203 = vmatpush3.bf16.msra.mxu0 %v200_v8 }
  0x1c   :  { %205 = vmatprep.subr.bf16.mxu0 %v204_v11 }
  0x1f   :  { %207 = vmatpush3.bf16.msra.mxu0 %v204_v11 }
  0x20   :  { %209 = vmatprep.subr.bf16.mxu0 %v208_v14 }
  0x23   :  { %211 = vmatpush3.bf16.msra.mxu0 %v208_v14 }
  0x24   :  { %213 = vmatprep.subr.bf16.mxu0 %v212_v17 }
  0x27   :  { %215 = vmatpush3.bf16.msra.mxu0 %v212_v17 }
  0x28   :  { %217 = vmatprep.subr.bf16.mxu0 %v216_v20 }
  0x2b   :  { %219 = vmatpush3.bf16.msra.mxu0 %v216_v20 }
  0x2c   :  { %221 = vmatprep.subr.bf16.mxu0 %v220_v23 }
  0x2f   :  { %223 = vmatpush3.bf16.msra.mxu0 %v220_v23 }
  0x30   :  { %225 = vmatprep.subr.bf16.mxu0 %v224_v26 }
  0x33   :  { %227 = vmatpush3.bf16.msra.mxu0 %v224_v26 }
  0x93   :  { %v31_v29 = vpop.permute.xlu0 %30 }
  0x94   :  { %vm35_vm0 = vcmp.eq.s32.totalorder %v26_v28, %v31_v29 }
  0x95   :  { %193 = vmatprep.mubr.msk.f32.mxu0 %vm35_vm0, %v262_v30 }
  0x97   :  { %v34_v31 = vpop.permute.xlu0 %33 }
  0x98   :  { %vm36_vm1 = vcmp.eq.s32.totalorder %v26_v28, %v34_v31 }
  0x99   :  { %194 = vmatmul.mubr.msk.f32.vlgmr.msra.gmra.mrb[0].mxu0 %vm36_vm1, %v262_v30 }
 0x16c   :  { %v195_v32 = vpop.f32.mrb[0].mxu0 }
 0x16d   :  { %133 = vst [vmem:[%s304_s2 + $0x8] sm:$0xff] %v195_v32  ;;  %v123_v33 = vpop.f32.mrb[1].mxu0 }
 0x16e   :  { %132 = vst [vmem:[%s304_s2] sm:$0xff] %v123_v33 }
 0x16f   :  { %138 = vsyncpa [#allocation3], 1 }

</bundles_post_ra>
